<compile_context>
chip_gen: v6e
topology: v6e:2x2x1
jax: 0.10.0
libtpu: 0.0.40
codegen_flags: <defaults>
</compile_context>

<pallas_src>
import jax
import jax.numpy as jnp
from jax import lax
from jax.experimental import pallas as pl
from jax.experimental.pallas import tpu as pltpu

N = 64             # number of graph nodes
NUM_FEATURES = 32  # dataset.num_features
HIDDEN = 16        # lin1 output size (fixed by the module)
NUM_CLASSES = 8    # dataset.num_classes
NUM_EDGES = 256

FPAD = 128         # lane-padded feature width (all feature axes padded to 128)
NEG_BIG = -1e30    # bias for padded logit columns so they vanish in log_softmax

_VMEM = pl.BlockSpec(memory_space=pltpu.MemorySpace.VMEM)   # whole array resident in VMEM
_SMEM = pl.BlockSpec(memory_space=pltpu.MemorySpace.SMEM)   # scalar(s) in SMEM


# ------------- fused kernel: lin1+relu -> prop1 -> prop2 -> lin2+log_softmax -------------
def agnn_net_kernel(x_ref, adj_ref, w1_ref, b1_ref, w2_ref, b2_ref, beta2_ref, o_ref):
    x = x_ref[...]        # [N, FPAD]  (first NUM_FEATURES columns real, rest zero)
    adj = adj_ref[...]    # [N, N]     (0/1 mask, self-loops included)

    # ---- lin1 + relu ----
    h = jnp.dot(x, w1_ref[...], preferred_element_type=jnp.float32) + b1_ref[...]
    h = jnp.maximum(h, 0.0)                     # [N, FPAD], padded hidden cols stay 0

    def prop(h, beta):
        # F.normalize(h, p=2, dim=-1, eps=1e-12) via EUP rsqrt (no sqrt+divide chain)
        rs = lax.rsqrt(jnp.maximum(jnp.sum(h * h, axis=-1, keepdims=True), 1e-24))
        hn = h * rs
        # beta folded into the LHS operand (scales an [N,FPAD] operand via the [N,1]
        # rsqrt factor, not the [N,N] similarity matrix).
        lhs = hn if beta is None else h * (beta * rs)
        # cosine similarities s[i,j] = beta * <hn_i, hn_j>  (contract lane axes)
        s = lax.dot_general(lhs, hn, (((1,), (1,)), ((), ())),
                            preferred_element_type=jnp.float32)        # [N, N]
        # Masked softmax with NO additive -inf bias: |s| <= |beta| so exp(s - rowmax)
        # cannot overflow, shift-invariance + the multiplicative adj mask give the
        # exact masked softmax, and self-loops guarantee denom > 0.
        m = jnp.max(s, axis=-1, keepdims=True)
        e = jnp.exp(s - m) * adj
        denom = jnp.sum(e, axis=-1, keepdims=True)
        p = e * pl.reciprocal(denom, approx=True)                       # EUP reciprocal
        # aggregate RAW (un-normalized) neighbor features, matching AGNNConv
        return jnp.dot(p, h, preferred_element_type=jnp.float32)

    h = prop(h, None)                 # prop1: beta fixed at 1.0 (requires_grad=False)
    h = prop(h, beta2_ref[0])         # prop2: learnable beta (SMEM scalar)

    # ---- lin2 + log_softmax ----
    # Padded logit columns carry bias -1e30 (w2 padded rows are zero), so they drop out
    # of both the row max and the exp-sum.
    y = jnp.dot(h, w2_ref[...], preferred_element_type=jnp.float32) + b2_ref[...]
    m = jnp.max(y, axis=-1, keepdims=True)
    z = y - m
    lse = jnp.log(jnp.sum(jnp.exp(z), axis=-1, keepdims=True))
    o_ref[...] = z - lse                                                # [N, FPAD] lane-dense


# ---------------- wrapper ----------------
def prepare_params(params):
    """One-time lane-padding of the weights (hoisted out of the per-call path)."""
    w1, b1, w2, b2, beta2 = params
    f_in, hidden = w1.shape
    n_classes = w2.shape[1]
    w1_p = jnp.pad(w1, ((0, FPAD - f_in), (0, FPAD - hidden)))
    b1_p = jnp.pad(b1, ((0, 0), (0, FPAD - hidden)))
    w2_p = jnp.pad(w2, ((0, FPAD - hidden), (0, FPAD - n_classes)))
    b2_p = jnp.pad(b2, ((0, 0), (0, FPAD - n_classes)), constant_values=NEG_BIG)
    return (w1_p, b1_p, w2_p, b2_p, beta2)


@jax.jit
def net_forward(x, adj, padded_params):
    """x: [N, NUM_FEATURES]; adj: [N, N] dense 0/1 mask WITH self-loops (so denom > 0)."""
    w1_p, b1_p, w2_p, b2_p, beta2 = padded_params
    n, f_in = x.shape
    x_p = jnp.pad(x, ((0, 0), (0, FPAD - f_in)))   # layout plumbing; fused by XLA
    out_p = pl.pallas_call(
        agnn_net_kernel,
        out_shape=jax.ShapeDtypeStruct((n, FPAD), jnp.float32),
        in_specs=[_VMEM, _VMEM, _VMEM, _VMEM, _VMEM, _VMEM, _SMEM],
        out_specs=_VMEM,
        cost_estimate=pl.CostEstimate(
            flops=8_400_000, transcendentals=17_000, bytes_accessed=215_000),
    )(x_p, adj, w1_p, b1_p, w2_p, b2_p, beta2)
    return out_p[:, :NUM_CLASSES]


# ---------------- pure-JAX reference (correctness check) ----------------
def reference_forward(x, adj, params):
    w1, b1, w2, b2, beta2 = params
    h = jnp.maximum(x @ w1 + b1, 0.0)

    def prop(h, beta):
        hn = h / jnp.maximum(jnp.linalg.norm(h, axis=-1, keepdims=True), 1e-12)
        s = beta * (hn @ hn.T)
        s = jnp.where(adj > 0.5, s, NEG_BIG)
        m = jnp.max(s, axis=-1, keepdims=True)
        e = jnp.where(adj > 0.5, jnp.exp(s - m), 0.0)
        p = e / jnp.sum(e, axis=-1, keepdims=True)
        return p @ h

    h = prop(h, 1.0)        # prop1: beta fixed at 1.0 (requires_grad=False)
    h = prop(h, beta2[0])   # prop2: learnable beta
    logits = h @ w2 + b2
    return jax.nn.log_softmax(logits, axis=-1)


if __name__ == "__main__":
    key = jax.random.PRNGKey(0)
    k_x, k_src, k_dst, k_w1, k_b1, k_w2, k_b2 = jax.random.split(key, 7)

    # node features (data.x)
    x = jax.random.normal(k_x, (N, NUM_FEATURES), dtype=jnp.float32)

    # edge_index -> dense adjacency mask with self-loops
    src = jax.random.randint(k_src, (NUM_EDGES,), 0, N)
    dst = jax.random.randint(k_dst, (NUM_EDGES,), 0, N)
    adj = jnp.zeros((N, N), dtype=jnp.float32)
    adj = adj.at[dst, src].set(1.0)             # edge j -> i stored at adj[i, j]
    adj = adj * (1.0 - jnp.eye(N))              # remove_self_loops
    adj = adj + jnp.eye(N, dtype=jnp.float32)   # add_self_loops
    # precondition for the bias-free masked softmax: every row has its self-loop
    assert bool(jnp.all(jnp.diag(adj) == 1.0)), "adjacency must include self-loops"

    # deterministic parameter init (Linear: U(-1/sqrt(fan_in), 1/sqrt(fan_in)))
    bound1 = 1.0 / jnp.sqrt(float(NUM_FEATURES))
    w1 = jax.random.uniform(k_w1, (NUM_FEATURES, HIDDEN), jnp.float32, -bound1, bound1)
    b1 = jax.random.uniform(k_b1, (1, HIDDEN), jnp.float32, -bound1, bound1)
    bound2 = 1.0 / jnp.sqrt(float(HIDDEN))
    w2 = jax.random.uniform(k_w2, (HIDDEN, NUM_CLASSES), jnp.float32, -bound2, bound2)
    b2 = jax.random.uniform(k_b2, (1, NUM_CLASSES), jnp.float32, -bound2, bound2)
    beta2 = jnp.array([1.0], dtype=jnp.float32)  # prop2: requires_grad=True, init 1.0

    params = (w1, b1, w2, b2, beta2)
    padded_params = prepare_params(params)       # pad weights ONCE, outside the call path

    out = net_forward(x, adj, padded_params)
    out = jax.block_until_ready(out)

    ref = reference_forward(x, adj, params)
    assert out.shape == (N, NUM_CLASSES)
    # tolerance covers the EUP approx-reciprocal (~1e-3 rel) in the softmax with margin;
    # all matmuls accumulate in f32.
    assert jnp.allclose(out, ref, atol=1e-2, rtol=1e-2), "mismatch vs. reference"
    assert jnp.all(jnp.isfinite(out)), "non-finite outputs"

    print("KERNEL_OK")
</pallas_src>

<mosaic_0001>
module attributes {stable_mosaic.version = 11 : i64} {
  func.func @agnn_net_kernel(%arg0: memref<64x128xf32, #tpu.memory_space<vmem>>, %arg1: memref<64x64xf32, #tpu.memory_space<vmem>>, %arg2: memref<128x128xf32, #tpu.memory_space<vmem>>, %arg3: memref<1x128xf32, #tpu.memory_space<vmem>>, %arg4: memref<128x128xf32, #tpu.memory_space<vmem>>, %arg5: memref<1x128xf32, #tpu.memory_space<vmem>>, %arg6: memref<1xf32, #tpu.memory_space<smem>>, %arg7: memref<64x128xf32, #tpu.memory_space<vmem>>) attributes {dimension_semantics = [], scalar_prefetch = 0 : i64, scratch_operands = 0 : i64, tpu.core_type = #tpu.core_type<tc>} {
    %c0 = arith.constant 0 : index
    %c0_0 = arith.constant 0 : index
    %0 = vector.load %arg0[%c0, %c0_0] : memref<64x128xf32, #tpu.memory_space<vmem>>, vector<64x128xf32>
    %c0_1 = arith.constant 0 : index
    %c0_2 = arith.constant 0 : index
    %1 = vector.load %arg1[%c0_1, %c0_2] : memref<64x64xf32, #tpu.memory_space<vmem>>, vector<64x64xf32>
    %c0_3 = arith.constant 0 : index
    %c0_4 = arith.constant 0 : index
    %2 = vector.load %arg2[%c0_3, %c0_4] : memref<128x128xf32, #tpu.memory_space<vmem>>, vector<128x128xf32>
    %cst = arith.constant dense<0.000000e+00> : vector<64x128xf32>
    %3 = tpu.matmul %0, %2, %cst {dimension_numbers = #tpu.dot_dimension_numbers<[1], [0], [0], [1], [0, 0, 1, 1], [], []>} : vector<64x128xf32>, vector<128x128xf32>, vector<64x128xf32> -> vector<64x128xf32>
    %c0_5 = arith.constant 0 : index
    %c0_6 = arith.constant 0 : index
    %4 = vector.load %arg3[%c0_5, %c0_6] : memref<1x128xf32, #tpu.memory_space<vmem>>, vector<1x128xf32>
    %5 = vector.broadcast %4 : vector<1x128xf32> to vector<64x128xf32>
    %6 = arith.addf %3, %5 : vector<64x128xf32>
    %cst_7 = arith.constant 0.000000e+00 : f32
    %7 = vector.broadcast %cst_7 : f32 to vector<64x128xf32>
    %8 = arith.maximumf %6, %7 : vector<64x128xf32>
    %9 = arith.mulf %8, %8 : vector<64x128xf32>
    %cst_8 = arith.constant dense<0.000000e+00> : vector<64xf32>
    %10 = vector.multi_reduction <add>, %9, %cst_8 [1] : vector<64x128xf32> to vector<64xf32>
    %11 = vector.shape_cast %10 : vector<64xf32> to vector<64x1xf32>
    %cst_9 = arith.constant 1.000000e-24 : f32
    %12 = vector.broadcast %cst_9 : f32 to vector<64x1xf32>
    %13 = arith.maximumf %11, %12 : vector<64x1xf32>
    %14 = math.rsqrt %13 : vector<64x1xf32>
    %15 = vector.broadcast %14 : vector<64x1xf32> to vector<64x128xf32>
    %16 = arith.mulf %8, %15 : vector<64x128xf32>
    %cst_10 = arith.constant dense<0.000000e+00> : vector<64x64xf32>
    %17 = tpu.matmul %16, %16, %cst_10 {dimension_numbers = #tpu.dot_dimension_numbers<[1], [1], [0], [0], [0, 0, 1, 0], [], []>} : vector<64x128xf32>, vector<64x128xf32>, vector<64x64xf32> -> vector<64x64xf32>
    %cst_11 = arith.constant dense<0xFF800000> : vector<64xf32>
    %18 = vector.multi_reduction <maximumf>, %17, %cst_11 [1] : vector<64x64xf32> to vector<64xf32>
    %19 = vector.shape_cast %18 : vector<64xf32> to vector<64x1xf32>
    %20 = vector.broadcast %19 : vector<64x1xf32> to vector<64x64xf32>
    %21 = arith.subf %17, %20 : vector<64x64xf32>
    %22 = math.exp %21 : vector<64x64xf32>
    %23 = arith.mulf %22, %1 : vector<64x64xf32>
    %cst_12 = arith.constant dense<0.000000e+00> : vector<64xf32>
    %24 = vector.multi_reduction <add>, %23, %cst_12 [1] : vector<64x64xf32> to vector<64xf32>
    %25 = vector.shape_cast %24 : vector<64xf32> to vector<64x1xf32>
    %26 = tpu.reciprocal %25 {approx = true} : vector<64x1xf32> -> vector<64x1xf32>
    %27 = vector.broadcast %26 : vector<64x1xf32> to vector<64x64xf32>
    %28 = arith.mulf %23, %27 : vector<64x64xf32>
    %cst_13 = arith.constant dense<0.000000e+00> : vector<64x128xf32>
    %29 = tpu.matmul %28, %8, %cst_13 {dimension_numbers = #tpu.dot_dimension_numbers<[1], [0], [0], [1], [0, 0, 1, 1], [], []>} : vector<64x64xf32>, vector<64x128xf32>, vector<64x128xf32> -> vector<64x128xf32>
    %c0_14 = arith.constant 0 : index
    %30 = memref.load %arg6[%c0_14] : memref<1xf32, #tpu.memory_space<smem>>
    %31 = arith.mulf %29, %29 : vector<64x128xf32>
    %cst_15 = arith.constant dense<0.000000e+00> : vector<64xf32>
    %32 = vector.multi_reduction <add>, %31, %cst_15 [1] : vector<64x128xf32> to vector<64xf32>
    %33 = vector.shape_cast %32 : vector<64xf32> to vector<64x1xf32>
    %cst_16 = arith.constant 1.000000e-24 : f32
    %34 = vector.broadcast %cst_16 : f32 to vector<64x1xf32>
    %35 = arith.maximumf %33, %34 : vector<64x1xf32>
    %36 = math.rsqrt %35 : vector<64x1xf32>
    %37 = vector.broadcast %36 : vector<64x1xf32> to vector<64x128xf32>
    %38 = arith.mulf %29, %37 : vector<64x128xf32>
    %39 = vector.broadcast %30 : f32 to vector<64x1xf32>
    %40 = arith.mulf %39, %36 : vector<64x1xf32>
    %41 = vector.broadcast %40 : vector<64x1xf32> to vector<64x128xf32>
    %42 = arith.mulf %29, %41 : vector<64x128xf32>
    %cst_17 = arith.constant dense<0.000000e+00> : vector<64x64xf32>
    %43 = tpu.matmul %42, %38, %cst_17 {dimension_numbers = #tpu.dot_dimension_numbers<[1], [1], [0], [0], [0, 0, 1, 0], [], []>} : vector<64x128xf32>, vector<64x128xf32>, vector<64x64xf32> -> vector<64x64xf32>
    %cst_18 = arith.constant dense<0xFF800000> : vector<64xf32>
    %44 = vector.multi_reduction <maximumf>, %43, %cst_18 [1] : vector<64x64xf32> to vector<64xf32>
    %45 = vector.shape_cast %44 : vector<64xf32> to vector<64x1xf32>
    %46 = vector.broadcast %45 : vector<64x1xf32> to vector<64x64xf32>
    %47 = arith.subf %43, %46 : vector<64x64xf32>
    %48 = math.exp %47 : vector<64x64xf32>
    %49 = arith.mulf %48, %1 : vector<64x64xf32>
    %cst_19 = arith.constant dense<0.000000e+00> : vector<64xf32>
    %50 = vector.multi_reduction <add>, %49, %cst_19 [1] : vector<64x64xf32> to vector<64xf32>
    %51 = vector.shape_cast %50 : vector<64xf32> to vector<64x1xf32>
    %52 = tpu.reciprocal %51 {approx = true} : vector<64x1xf32> -> vector<64x1xf32>
    %53 = vector.broadcast %52 : vector<64x1xf32> to vector<64x64xf32>
    %54 = arith.mulf %49, %53 : vector<64x64xf32>
    %cst_20 = arith.constant dense<0.000000e+00> : vector<64x128xf32>
    %55 = tpu.matmul %54, %29, %cst_20 {dimension_numbers = #tpu.dot_dimension_numbers<[1], [0], [0], [1], [0, 0, 1, 1], [], []>} : vector<64x64xf32>, vector<64x128xf32>, vector<64x128xf32> -> vector<64x128xf32>
    %c0_21 = arith.constant 0 : index
    %c0_22 = arith.constant 0 : index
    %56 = vector.load %arg4[%c0_21, %c0_22] : memref<128x128xf32, #tpu.memory_space<vmem>>, vector<128x128xf32>
    %cst_23 = arith.constant dense<0.000000e+00> : vector<64x128xf32>
    %57 = tpu.matmul %55, %56, %cst_23 {dimension_numbers = #tpu.dot_dimension_numbers<[1], [0], [0], [1], [0, 0, 1, 1], [], []>} : vector<64x128xf32>, vector<128x128xf32>, vector<64x128xf32> -> vector<64x128xf32>
    %c0_24 = arith.constant 0 : index
    %c0_25 = arith.constant 0 : index
    %58 = vector.load %arg5[%c0_24, %c0_25] : memref<1x128xf32, #tpu.memory_space<vmem>>, vector<1x128xf32>
    %59 = vector.broadcast %58 : vector<1x128xf32> to vector<64x128xf32>
    %60 = arith.addf %57, %59 : vector<64x128xf32>
    %cst_26 = arith.constant dense<0xFF800000> : vector<64xf32>
    %61 = vector.multi_reduction <maximumf>, %60, %cst_26 [1] : vector<64x128xf32> to vector<64xf32>
    %62 = vector.shape_cast %61 : vector<64xf32> to vector<64x1xf32>
    %63 = vector.broadcast %62 : vector<64x1xf32> to vector<64x128xf32>
    %64 = arith.subf %60, %63 : vector<64x128xf32>
    %65 = math.exp %64 : vector<64x128xf32>
    %cst_27 = arith.constant dense<0.000000e+00> : vector<64xf32>
    %66 = vector.multi_reduction <add>, %65, %cst_27 [1] : vector<64x128xf32> to vector<64xf32>
    %67 = vector.shape_cast %66 : vector<64xf32> to vector<64x1xf32>
    %68 = math.log %67 : vector<64x1xf32>
    %69 = vector.broadcast %68 : vector<64x1xf32> to vector<64x128xf32>
    %70 = arith.subf %64, %69 : vector<64x128xf32>
    %c0_28 = arith.constant 0 : index
    %c0_29 = arith.constant 0 : index
    %71 = vector.load %arg7[%c0_28, %c0_29] : memref<64x128xf32, #tpu.memory_space<vmem>>, vector<64x128xf32>
    tpu.vector_store %arg7[%c0_28, %c0_29], %70 {strides = array<i32>} : memref<64x128xf32, #tpu.memory_space<vmem>>, vector<64x128xf32>,
    return
  }
}

</mosaic_0001>

<bundles_post_ra>
// kernel: net_forward.1
= control target key start
LH: loop header
LB: loop body
LE: loop exit
PB: predicated region body
PF: predicated region fallthrough
CT: control target
= control target key end

     0   :  { %13 = vsyncpa [#allocation4], 0  ;;  %s1672_s24 = smov [#allocation3]   ;;  %s2079_s0 = inlined_call_operand.vmem [shape: f32[64,128], index: 0, kind: input, shape index: {}]   ;;  %s2080_s1 = inlined_call_operand.vmem [shape: f32[64,64], index: 1, kind: input, shape index: {}]   ;;  %s2081_s2 = inlined_call_operand.vmem [shape: f32[128,128], index: 2, kind: input, shape index: {}]   ;;  %s2082_s3 = inlined_call_operand.vmem [shape: f32[1,128], index: 3, kind: input, shape index: {}]   ;;  %s2083_s4 = inlined_call_operand.hbm [shape: f32[128,128], index: 4, kind: input, shape index: {}]   ;;  %s2084_s5 = inlined_call_operand.vmem [shape: f32[1,128], index: 5, kind: input, shape index: {}]   ;;  %s2085_s6 = inlined_call_operand.<no memory space> [shape: f32[1], index: 6, kind: input, shape index: {}]   ;;  %s2086_s7 = inlined_call_operand.vmem [shape: f32[64,128], index: 7, kind: output, shape index: {}]  }
   0x1   :  { %s27_s25 = sshll.u32 %s1672_s24, 4  ;;  %s28_s25 = int_to_ptr.vmem [resolvable:$true] %s27_s25 }
   0x2   :  { %s1658_s26 = scalar_lea.vmem %s28_s25, 2048  ;;  %p1663_p1 = scmp.lt.s32.totalorder %s28_s25, %s28_s25 }
   0x3   :  { %p1659_p0 = scmp.ne.s32.totalorder %s28_s25, %s1658_s26  ;;  %p1664_p2 = scmp.lt.s32.totalorder %s1658_s26, %s1658_s26 }
   0x5   :  { %p1665_p3 = por %p1664_p2, %p1663_p1 }
   0x7   :  { %p1666_p4 = pnand %p1665_p3, %p1659_p0 }
   0x9   :  { %1669 = shalt.err (!%p1666_p4)
}
   0xa   :  { %s1673_s27 = smov 128   ;;  %s1674_s28 = smov 8  }
   0xb   :  { %33 = dma.hbm_to_vmem [thread:$0]  %s2083_s4, 2048, %s28_s25, [#allocation4], %s1673_s27, %s1673_s27, %s1674_s28  }
   0xc   :  { %1670 = dma.done.wait [#allocation4], 2048  }
   0xd   :  { %1671 = vsyncadd [#allocation4], 4294965248  ;;  %v72_v0 = vld [vmem:[%s2081_s2 + $0x78] sm:$0xff]  ;;  %v71_v1 = vld [vmem:[%s2081_s2 + $0x70] sm:$0xff]  ;;  %vm346_vm0 = vcmask 523264  }
   0xe   :  { %1319 = vmatprep.subr.mxu0 %v72_v0  ;;  %v70_v2 = vld [vmem:[%s2081_s2 + $0x68] sm:$0xff]  ;;  %v69_v3 = vld [vmem:[%s2081_s2 + $0x60] sm:$0xff]  ;;  %v68_v5 = vld [vmem:[%s2081_s2 + $0x58] sm:$0xff] }
   0xf   :  { %1320 = vmatpush3.msra.mxu0 %v72_v0  ;;  %v41_v4 = vld [vmem:[%s2079_s0] sm:$0xff]  ;;  %v67_v6 = vld [vmem:[%s2081_s2 + $0x50] sm:$0xff]  ;;  %v66_v7 = vld [vmem:[%s2081_s2 + $0x48] sm:$0xff] }
  0x10   :  { %1321 = vmatprep.subr.mxu0 %v71_v1  ;;  %1351 = vmatprep.mubr.f32.mxu0 %v41_v4  ;;  %v65_v8 = vld [vmem:[%s2081_s2 + $0x40] sm:$0xff]  ;;  %v64_v9 = vld [vmem:[%s2081_s2 + $0x38] sm:$0xff]  ;;  %v63_v10 = vld [vmem:[%s2081_s2 + $0x30] sm:$0xff] }
  0x11   :  { %1322 = vmatpush3.msra.mxu0 %v71_v1  ;;  %v62_v11 = vld [vmem:[%s2081_s2 + $0x28] sm:$0xff]  ;;  %v61_v12 = vld [vmem:[%s2081_s2 + $0x20] sm:$0xff]  ;;  %v60_v13 = vld [vmem:[%s2081_s2 + $0x18] sm:$0xff] }
  0x12   :  { %1323 = vmatprep.subr.mxu0 %v70_v2  ;;  %v59_v14 = vld [vmem:[%s2081_s2 + $0x10] sm:$0xff]  ;;  %v58_v15 = vld [vmem:[%s2081_s2 + $0x8] sm:$0xff]  ;;  %v57_v16 = vld [vmem:[%s2081_s2] sm:$0xff] }
  0x13   :  { %1324 = vmatpush3.msra.mxu0 %v70_v2  ;;  %v42_v17 = vld [vmem:[%s2079_s0 + $0x8] sm:$0xff]  ;;  %v43_v18 = vld [vmem:[%s2079_s0 + $0x10] sm:$0xff]  ;;  %v44_v19 = vld [vmem:[%s2079_s0 + $0x18] sm:$0xff] }
  0x14   :  { %1325 = vmatprep.subr.mxu0 %v69_v3  ;;  %v45_v20 = vld [vmem:[%s2079_s0 + $0x20] sm:$0xff]  ;;  %v46_v21 = vld [vmem:[%s2079_s0 + $0x28] sm:$0xff]  ;;  %v47_v22 = vld [vmem:[%s2079_s0 + $0x30] sm:$0xff] }
  0x15   :  { %1326 = vmatpush3.msra.mxu0 %v69_v3  ;;  %v48_v23 = vld [vmem:[%s2079_s0 + $0x38] sm:$0xff]  ;;  %v1189_v28 = vld [vmem:[%s2082_s3] ss:$0 sm:$0xff] }
  0x16   :  { %1327 = vmatprep.subr.mxu0 %v68_v5 }
  0x17   :  { %1328 = vmatpush3.msra.mxu0 %v68_v5 }
  0x18   :  { %1329 = vmatprep.subr.mxu0 %v67_v6 }
  0x19   :  { %1330 = vmatpush3.msra.mxu0 %v67_v6 }
  0x1a   :  { %1331 = vmatprep.subr.mxu0 %v66_v7 }
  0x1b   :  { %1332 = vmatpush3.msra.mxu0 %v66_v7 }
  0x1c   :  { %1333 = vmatprep.subr.mxu0 %v65_v8 }
  0x1d   :  { %1334 = vmatpush3.msra.mxu0 %v65_v8 }
  0x1e   :  { %1335 = vmatprep.subr.mxu0 %v64_v9 }
  0x1f   :  { %1336 = vmatpush3.msra.mxu0 %v64_v9 }
  0x20   :  { %1337 = vmatprep.subr.mxu0 %v63_v10 }
  0x21   :  { %1338 = vmatpush3.msra.mxu0 %v63_v10 }
  0x22   :  { %1339 = vmatprep.subr.mxu0 %v62_v11 }
  0x23   :  { %1340 = vmatpush3.msra.mxu0 %v62_v11 }
  0x24   :  { %1341 = vmatprep.subr.mxu0 %v61_v12 }
  0x25   :  { %1342 = vmatpush3.msra.mxu0 %v61_v12 }
  0x26   :  { %1343 = vmatprep.subr.mxu0 %v60_v13 }
  0x27   :  { %1344 = vmatpush3.msra.mxu0 %v60_v13 }
  0x28   :  { %1345 = vmatprep.subr.mxu0 %v59_v14 }
  0x29   :  { %1346 = vmatpush3.msra.mxu0 %v59_v14 }
  0x2a   :  { %1347 = vmatprep.subr.mxu0 %v58_v15 }
  0x2b   :  { %1348 = vmatpush3.msra.mxu0 %v58_v15 }
  0x2c   :  { %1349 = vmatprep.subr.mxu0 %v57_v16 }
  0x2d   :  { %1350 = vmatpush3.msra.mxu0 %v57_v16 }
  0x2e   :  { %1352 = vmatmul.mubr.f32.vlgmr.msra.gmra.mxu0 %v42_v17 }
  0x2f   :  { %1354 = vmatprep.mubr.f32.mxu0 %v43_v18 }
  0x32   :  { %1355 = vmatmul.mubr.f32.gmra.mxu0 %v44_v19 }
  0x33   :  { %1357 = vmatprep.mubr.f32.mxu0 %v45_v20 }
  0x36   :  { %1358 = vmatmul.mubr.f32.gmra.mxu0 %v46_v21 }
  0x37   :  { %1360 = vmatprep.mubr.f32.mxu0 %v47_v22 }
  0x3a   :  { %1361 = vmatmul.mubr.f32.gmra.mxu0 %v48_v23 }
  0xee   :  { %v1353_v24 = vpop.f32.mrf.mxu0 }
  0xef   :  { %v152_v48 = vadd.f32 %v1353_v24, %v1189_v28 }
  0xf0   :  { %v146_v25 = vpop.f32.mrf.mxu0 }
  0xf1   :  { %v147_v42 = vadd.f32 %v1189_v28, %v146_v25  ;;  %v1817_v53 = vmax.f32 %v152_v48, 0.0 }
  0xf2   :  { %v1356_v26 = vpop.f32.mrf.mxu0 }
  0xf3   :  { %v162_v43 = vadd.f32 %v1356_v26, %v1189_v28  ;;  %v1809_v49 = vmax.f32 %v147_v42, 0.0  ;;  %v194_v56 = vmul.f32 %v1817_v53, %v1817_v53 }
  0xf4   :  { %v156_v27 = vpop.f32.mrf.mxu0 }
  0xf5   :  { %v157_v35 = vadd.f32 %v1189_v28, %v156_v27  ;;  %v1811_v50 = vmax.f32 %v162_v43, 0.0  ;;  %v193_v55 = vmul.f32 %v1809_v49, %v1809_v49 }
  0xf6   :  { %v1359_v29 = vpop.f32.mrf.mxu0 }
  0xf7   :  { %v172_v30 = vadd.f32 %v1359_v29, %v1189_v28  ;;  %v1801_v44 = vmax.f32 %v157_v35, 0.0  ;;  %v196_v54 = vmul.f32 %v1811_v50, %v1811_v50 }
  0xf8   :  { %v166_v31 = vpop.f32.mrf.mxu0 }
  0xf9   :  { %v1793_v32 = vmax.f32 %v172_v30, 0.0  ;;  %v167_v33 = vadd.f32 %v1189_v28, %v166_v31  ;;  %v195_v52 = vmul.f32 %v1801_v44, %v1801_v44 }
  0xfa   :  { %v1362_v34 = vpop.f32.mrf.mxu0 }
  0xfb   :  { %v1795_v36 = vmax.f32 %v167_v33, 0.0  ;;  %v182_v37 = vadd.f32 %v1362_v34, %v1189_v28  ;;  %v198_v38 = vmul.f32 %v1793_v32, %v1793_v32 }
  0xfc   :  { %v176_v39 = vpop.f32.mrf.mxu0 }
  0xfd   :  { %v1799_v40 = vmax.f32 %v182_v37, 0.0  ;;  %v177_v41 = vadd.f32 %v1189_v28, %v176_v39  ;;  %211 = vadd.xlane.f32.xlu1 %v198_v38  ;;  %v197_v47 = vmul.f32 %v1795_v36, %v1795_v36 }
  0xff   :  { %v1803_v45 = vmax.f32 %v177_v41, 0.0  ;;  %v200_v46 = vmul.f32 %v1799_v40, %v1799_v40 }
 0x101   :  { %215 = vadd.xlane.f32.xlu0 %v200_v46  ;;  %209 = vadd.xlane.f32.xlu1 %v197_v47  ;;  %v199_v51 = vmul.f32 %v1803_v45, %v1803_v45 }
 0x105   :  { %213 = vadd.xlane.f32.xlu0 %v199_v51  ;;  %205 = vadd.xlane.f32.xlu1 %v195_v52 }
 0x109   :  { %207 = vadd.xlane.f32.xlu0 %v196_v54  ;;  %201 = vadd.xlane.f32.xlu1 %v193_v55 }
 0x10d   :  { %203 = vadd.xlane.f32.xlu0 %v194_v56 }
 0x186   :  { %v212_v57 = vpop.xlane.xlu1 %211 }
 0x187   :  { %v222_v61 = vmax.f32 %v212_v57, 1e-24 }
 0x18a   :  { %v216_v58 = vpop.xlane.xlu0 %215  ;;  %v210_v59 = vpop.xlane.xlu1 %209 }
 0x18b   :  { %v224_v60 = vmax.f32 %v216_v58, 1e-24  ;;  %v221_v1 = vmax.f32 %v210_v59, 1e-24 }
 0x18d   :  { %1522 = vrsqrt.f32 %v224_v60 }
 0x18e   :  { %v214_v62 = vpop.xlane.xlu0 %213  ;;  %v206_v63 = vpop.xlane.xlu1 %205  ;;  %1524 = vrsqrt.f32 %v222_v61 }
 0x18f   :  { %v223_v0 = vmax.f32 %v214_v62, 1e-24  ;;  %v219_v6 = vmax.f32 %v206_v63, 1e-24 }
 0x191   :  { %1526 = vrsqrt.f32 %v223_v0  ;;  %v1860_v0 = vld [vmem:[%s2080_s1 + $0x8] sm:$0xff] }
 0x192   :  { %v208_v2 = vpop.xlane.xlu0 %207  ;;  %v202_v3 = vpop.xlane.xlu1 %201  ;;  %1528 = vrsqrt.f32 %v221_v1 }
 0x193   :  { %v217_v4 = vmax.f32 %v202_v3, 1e-24  ;;  %v220_v5 = vmax.f32 %v208_v2, 1e-24  ;;  %v1865_v3 = vld [vmem:[%s2080_s1] sm:$0xff] }
 0x195   :  { %1530 = vrsqrt.f32 %v217_v4 }
 0x196   :  { %1532 = vrsqrt.f32 %v220_v5  ;;  %v204_v8 = vpop.xlane.xlu0 %203 }
 0x197   :  { %1534 = vrsqrt.f32 %v219_v6  ;;  %v218_v11 = vmax.f32 %v204_v8, 1e-24  ;;  %v1871_v6 = vld [vmem:[%s2080_s1 + $0x18] sm:$0xff] }
 0x199   :  { %1536 = vrsqrt.f32 %v218_v11 }
 0x19a   :  { %v1523_v7 = vpop.eup %1522 }
 0x19b   :  { %v240_v9 = vmul.f32 %v1523_v7, %v1799_v40  ;;  %v1525_v10 = vpop.eup %1524 }
 0x19c   :  { %v238_v14 = vmul.f32 %v1525_v10, %v1793_v32  ;;  %v1878_v10 = vld [vmem:[%s2080_s1 + $0x10] sm:$0xff] }
 0x19d   :  { %1363 = vmatprep.subr.mxu1 %v240_v9 }
 0x19e   :  { %v1527_v12 = vpop.eup %1526  ;;  %1364 = vmatpush3.xpose.msra.mxu1 %v240_v9 }
 0x19f   :  { %v239_v13 = vmul.f32 %v1527_v12, %v1803_v45  ;;  %v1529_v15 = vpop.eup %1528 }
 0x1a0   :  { %v237_v18 = vmul.f32 %v1529_v15, %v1795_v36 }
 0x1a1   :  { %1365 = vmatprep.subr.mxu1 %v239_v13 }
 0x1a2   :  { %1366 = vmatpush3.xpose.msra.mxu1 %v239_v13  ;;  %v1531_v16 = vpop.eup %1530 }
 0x1a3   :  { %1367 = vmatprep.subr.mxu1 %v238_v14  ;;  %v233_v17 = vmul.f32 %v1531_v16, %v1809_v49  ;;  %v1533_v19 = vpop.eup %1532 }
 0x1a4   :  { %v236_v20 = vmul.f32 %v1533_v19, %v1811_v50  ;;  %v1535_v21 = vpop.eup %1534 }
 0x1a5   :  { %1379 = vmatprep.mubr.f32.mxu1 %v233_v17  ;;  %v235_v22 = vmul.f32 %v1535_v21, %v1801_v44 }
 0x1a6   :  { %1368 = vmatpush3.xpose.msra.mxu1 %v238_v14  ;;  %v1537_v23 = vpop.eup %1536 }
 0x1a7   :  { %1369 = vmatprep.subr.mxu1 %v237_v18  ;;  %v234_v24 = vmul.f32 %v1537_v23, %v1817_v53 }
 0x1aa   :  { %1370 = vmatpush3.xpose.msra.mxu1 %v237_v18 }
 0x1ab   :  { %1371 = vmatprep.subr.mxu1 %v236_v20 }
 0x1ae   :  { %1372 = vmatpush3.xpose.msra.mxu1 %v236_v20 }
 0x1af   :  { %1373 = vmatprep.subr.mxu1 %v235_v22 }
 0x1b2   :  { %1374 = vmatpush3.xpose.msra.mxu1 %v235_v22 }
 0x1b3   :  { %1375 = vmatprep.subr.mxu1 %v234_v24 }
 0x1b6   :  { %1376 = vmatpush3.xpose.msra.mxu1 %v234_v24 }
 0x1b7   :  { %1377 = vmatprep.subr.mxu1 %v233_v17 }
 0x1ba   :  { %1378 = vmatpush3.xpose.msra.mxu1 %v233_v17 }
 0x1bb   :  { %1391 = vmatprep.subr.mxu1 %v1799_v40 }
 0x1bd   :  { %1380 = vmatmul.mubr.f32.vlgmr.msra.gmra.mxu1 %v234_v24 }
 0x1be   :  { %1382 = vmatprep.mubr.f32.mxu1 %v235_v22  ;;  %1392 = vmatpush3.msra.mxu1 %v1799_v40  ;;  %v1899_v22 = vld [vmem:[%s2080_s1 + $0x38] sm:$0xff] }
 0x1bf   :  { %1393 = vmatprep.subr.mxu1 %v1803_v45 }
 0x1c0   :  { %1394 = vmatpush3.msra.mxu1 %v1803_v45 }
 0x1c1   :  { %1383 = vmatmul.mubr.f32.gmra.mxu1 %v236_v20  ;;  %1395 = vmatprep.subr.mxu1 %v1793_v32 }
 0x1c2   :  { %1385 = vmatprep.mubr.f32.mxu1 %v237_v18  ;;  %1396 = vmatpush3.msra.mxu1 %v1793_v32  ;;  %v1892_v18 = vld [vmem:[%s2080_s1 + $0x20] sm:$0xff] }
 0x1c3   :  { %1397 = vmatprep.subr.mxu1 %v1795_v36 }
 0x1c4   :  { %1398 = vmatpush3.msra.mxu1 %v1795_v36 }
 0x1c5   :  { %1386 = vmatmul.mubr.f32.gmra.mxu1 %v238_v14  ;;  %1399 = vmatprep.subr.mxu1 %v1811_v50  ;;  %v1885_v14 = vld [vmem:[%s2080_s1 + $0x28] sm:$0xff] }
 0x1c6   :  { %1388 = vmatprep.mubr.f32.mxu1 %v239_v13  ;;  %1400 = vmatpush3.msra.mxu1 %v1811_v50 }
 0x1c7   :  { %1401 = vmatprep.subr.mxu1 %v1801_v44 }
 0x1c8   :  { %1402 = vmatpush3.msra.mxu1 %v1801_v44 }
 0x1c9   :  { %1389 = vmatmul.mubr.f32.gmra.mxu1 %v240_v9  ;;  %1403 = vmatprep.subr.mxu1 %v1817_v53 }
 0x1ca   :  { %1404 = vmatpush3.msra.mxu1 %v1817_v53 }
 0x1cb   :  { %1405 = vmatprep.subr.mxu1 %v1809_v49 }
 0x1cc   :  { %1406 = vmatpush3.msra.mxu1 %v1809_v49 }
 0x27d   :  { %v1381_v25 = vpop.f32.mrf.mxu1 }
 0x27e   :  { %v350_v26 = vsel %vm346_vm0, %v1381_v25, -inf }
 0x27f   :  { %351 = vmax.xlane.f32.xlu1 %v350_v26  ;;  %v307_v27 = vpop.f32.mrf.mxu1  ;;  %v1906_v26 = vld [vmem:[%s2080_s1 + $0x30] sm:$0xff] }
 0x280   :  { %v347_v28 = vsel %vm346_vm0, %v307_v27, -inf }
 0x281   :  { %348 = vmax.xlane.f32.xlu0 %v347_v28  ;;  %v1384_v29 = vpop.f32.mrf.mxu1 }
 0x282   :  { %v356_v30 = vsel %vm346_vm0, %v1384_v29, -inf }
 0x283   :  { %357 = vmax.xlane.f32.xlu1 %v356_v30  ;;  %v317_v31 = vpop.f32.mrf.mxu1 }
 0x284   :  { %v353_v32 = vsel %vm346_vm0, %v317_v31, -inf }
 0x285   :  { %354 = vmax.xlane.f32.xlu0 %v353_v32  ;;  %v1387_v33 = vpop.f32.mrf.mxu1 }
 0x286   :  { %v362_v34 = vsel %vm346_vm0, %v1387_v33, -inf }
 0x287   :  { %363 = vmax.xlane.f32.xlu1 %v362_v34  ;;  %v327_v35 = vpop.f32.mrf.mxu1 }
 0x288   :  { %v359_v36 = vsel %vm346_vm0, %v327_v35, -inf }
 0x289   :  { %360 = vmax.xlane.f32.xlu0 %v359_v36  ;;  %v1390_v37 = vpop.f32.mrf.mxu1 }
 0x28a   :  { %v368_v38 = vsel %vm346_vm0, %v1390_v37, -inf }
 0x28b   :  { %369 = vmax.xlane.f32.xlu1 %v368_v38  ;;  %v337_v39 = vpop.f32.mrf.mxu1 }
 0x28c   :  { %v365_v40 = vsel %vm346_vm0, %v337_v39, -inf }
 0x28d   :  { %366 = vmax.xlane.f32.xlu0 %v365_v40 }
 0x308   :  { %v352_v41 = vpop.xlane.xlu1 %351 }
 0x309   :  { %v372_v42 = vsub.f32 %v1381_v25, %v352_v41 }
 0x30a   :  { %v349_v43 = vpop.xlane.xlu0 %348 }
 0x30b   :  { %v381_v44 = vmul.f32 1.442695, %v372_v42  ;;  %v371_v45 = vsub.f32 %v307_v27, %v349_v43 }
 0x30c   :  { %v358_v46 = vpop.xlane.xlu1 %357 }
 0x30d   :  { %1538 = vpow2.f32 %v381_v44  ;;  %v379_v47 = vmul.f32 1.442695, %v371_v45  ;;  %v374_v48 = vsub.f32 %v1384_v29, %v358_v46 }
 0x30e   :  { %v355_v49 = vpop.xlane.xlu0 %354 }
 0x30f   :  { %1540 = vpow2.f32 %v379_v47  ;;  %v385_v50 = vmul.f32 1.442695, %v374_v48  ;;  %v373_v51 = vsub.f32 %v317_v31, %v355_v49 }
 0x310   :  { %v364_v52 = vpop.xlane.xlu1 %363 }
 0x311   :  { %1542 = vpow2.f32 %v385_v50  ;;  %v383_v53 = vmul.f32 1.442695, %v373_v51  ;;  %v376_v54 = vsub.f32 %v1387_v33, %v364_v52 }
 0x312   :  { %v361_v55 = vpop.xlane.xlu0 %360 }
 0x313   :  { %1544 = vpow2.f32 %v383_v53  ;;  %v389_v56 = vmul.f32 1.442695, %v376_v54  ;;  %v375_v57 = vsub.f32 %v327_v35, %v361_v55 }
 0x314   :  { %v370_v58 = vpop.xlane.xlu1 %369 }
 0x315   :  { %1546 = vpow2.f32 %v389_v56  ;;  %v387_v59 = vmul.f32 1.442695, %v375_v57  ;;  %v378_v60 = vsub.f32 %v1390_v37, %v370_v58 }
 0x316   :  { %v367_v61 = vpop.xlane.xlu0 %366 }
 0x317   :  { %1548 = vpow2.f32 %v387_v59  ;;  %v393_v62 = vmul.f32 1.442695, %v378_v60  ;;  %v377_v63 = vsub.f32 %v337_v39, %v367_v61 }
 0x319   :  { %1550 = vpow2.f32 %v393_v62  ;;  %v391_v1 = vmul.f32 1.442695, %v377_v63 }
 0x31a   :  { %v1539_v2 = vpop.eup %1538 }
 0x31b   :  { %1552 = vpow2.f32 %v391_v1  ;;  %v396_v4 = vmul.f32 %v1539_v2, %v1860_v0 }
 0x31c   :  { %v1541_v5 = vpop.eup %1540 }
 0x31d   :  { %v406_v7 = vsel %vm346_vm0, %v396_v4, 0.0  ;;  %v395_v8 = vmul.f32 %v1541_v5, %v1865_v3 }
 0x31e   :  { %v1543_v9 = vpop.eup %1542  ;;  %407 = vadd.xlane.f32.xlu1 %v406_v7 }
 0x31f   :  { %v403_v11 = vsel %vm346_vm0, %v395_v8, 0.0  ;;  %v398_v12 = vmul.f32 %v1543_v9, %v1871_v6 }
 0x320   :  { %v1545_v13 = vpop.eup %1544  ;;  %404 = vadd.xlane.f32.xlu0 %v403_v11 }
 0x321   :  { %v412_v15 = vsel %vm346_vm0, %v398_v12, 0.0  ;;  %v397_v16 = vmul.f32 %v1545_v13, %v1878_v10 }
 0x322   :  { %v1547_v17 = vpop.eup %1546  ;;  %413 = vadd.xlane.f32.xlu1 %v412_v15 }
 0x323   :  { %v409_v19 = vsel %vm346_vm0, %v397_v16, 0.0  ;;  %v400_v20 = vmul.f32 %v1547_v17, %v1885_v14 }
 0x324   :  { %v1549_v21 = vpop.eup %1548  ;;  %410 = vadd.xlane.f32.xlu0 %v409_v19 }
 0x325   :  { %v418_v23 = vsel %vm346_vm0, %v400_v20, 0.0  ;;  %v399_v24 = vmul.f32 %v1549_v21, %v1892_v18 }
 0x326   :  { %v1551_v25 = vpop.eup %1550  ;;  %419 = vadd.xlane.f32.xlu1 %v418_v23 }
 0x327   :  { %v415_v27 = vsel %vm346_vm0, %v399_v24, 0.0  ;;  %v402_v28 = vmul.f32 %v1551_v25, %v1899_v22 }
 0x328   :  { %v1553_v29 = vpop.eup %1552  ;;  %416 = vadd.xlane.f32.xlu0 %v415_v27 }
 0x329   :  { %v424_v30 = vsel %vm346_vm0, %v402_v28, 0.0  ;;  %v401_v31 = vmul.f32 %v1553_v29, %v1906_v26 }
 0x32a   :  { %425 = vadd.xlane.f32.xlu1 %v424_v30 }
 0x32b   :  { %v421_v32 = vsel %vm346_vm0, %v401_v31, 0.0 }
 0x32c   :  { %422 = vadd.xlane.f32.xlu0 %v421_v32 }
 0x3a7   :  { %v408_v33 = vpop.xlane.xlu1 %407 }
 0x3a8   :  { %1554 = vrcp.f32 %v408_v33 }
 0x3a9   :  { %v405_v34 = vpop.xlane.xlu0 %404 }
 0x3aa   :  { %1556 = vrcp.f32 %v405_v34 }
 0x3ab   :  { %v414_v35 = vpop.xlane.xlu1 %413 }
 0x3ac   :  { %1558 = vrcp.f32 %v414_v35 }
 0x3ad   :  { %v411_v36 = vpop.xlane.xlu0 %410 }
 0x3ae   :  { %1560 = vrcp.f32 %v411_v36 }
 0x3af   :  { %v420_v37 = vpop.xlane.xlu1 %419 }
 0x3b0   :  { %1562 = vrcp.f32 %v420_v37 }
 0x3b1   :  { %v417_v38 = vpop.xlane.xlu0 %416 }
 0x3b2   :  { %1564 = vrcp.f32 %v417_v38 }
 0x3b3   :  { %v426_v39 = vpop.xlane.xlu1 %425 }
 0x3b4   :  { %1566 = vrcp.f32 %v426_v39 }
 0x3b5   :  { %v423_v40 = vpop.xlane.xlu0 %422  ;;  %v1555_v41 = vpop.eup %1554 }
 0x3b6   :  { %1568 = vrcp.f32 %v423_v40  ;;  %v436_v44 = vmul.f32 %v1555_v41, %v396_v4 }
 0x3b7   :  { %v1557_v42 = vpop.eup %1556 }
 0x3b8   :  { %v435_v43 = vmul.f32 %v1557_v42, %v395_v8 }
 0x3b9   :  { %v1559_v45 = vpop.eup %1558 }
 0x3ba   :  { %1407 = vmatprep.mubr.msk.f32.mxu1 %vm346_vm0, %v435_v43  ;;  %v438_v48 = vmul.f32 %v1559_v45, %v398_v12  ;;  %v621_v43 = vstv %s2085_s6 }
 0x3bb   :  { %v1561_v46 = vpop.eup %1560  ;;  %1408 = vmatmul.mubr.msk.f32.vlgmr.msra.gmra.mxu1 %vm346_vm0, %v436_v44 }
 0x3bc   :  { %v437_v47 = vmul.f32 %v1561_v46, %v397_v16 }
 0x3bd   :  { %v1563_v49 = vpop.eup %1562 }
 0x3be   :  { %1410 = vmatprep.mubr.msk.f32.mxu1 %vm346_vm0, %v437_v47  ;;  %v440_v52 = vmul.f32 %v1563_v49, %v400_v20 }
 0x3bf   :  { %v1565_v50 = vpop.eup %1564  ;;  %1411 = vmatmul.mubr.msk.f32.gmra.mxu1 %vm346_vm0, %v438_v48 }
 0x3c0   :  { %v439_v51 = vmul.f32 %v1565_v50, %v399_v24 }
 0x3c1   :  { %v1567_v53 = vpop.eup %1566 }
 0x3c2   :  { %1413 = vmatprep.mubr.msk.f32.mxu1 %vm346_vm0, %v439_v51  ;;  %v442_v56 = vmul.f32 %v1567_v53, %v402_v28 }
 0x3c3   :  { %v1569_v54 = vpop.eup %1568  ;;  %1414 = vmatmul.mubr.msk.f32.gmra.mxu1 %vm346_vm0, %v440_v52 }
 0x3c4   :  { %v441_v55 = vmul.f32 %v1569_v54, %v401_v31 }
 0x3c6   :  { %1416 = vmatprep.mubr.msk.f32.mxu1 %vm346_vm0, %v441_v55 }
 0x3c7   :  { %1417 = vmatmul.mubr.msk.f32.gmra.mxu1 %vm346_vm0, %v442_v56 }
 0x47b   :  { %v1921_v57 = vpop.f32.mrf.mxu1 }
 0x47c   :  { %v574_v11 = vmul.f32 %v1921_v57, %v1921_v57 }
 0x47d   :  { %v1923_v58 = vpop.f32.mrf.mxu1 }
 0x47e   :  { %v573_v12 = vmul.f32 %v1923_v58, %v1923_v58 }
 0x47f   :  { %v1925_v59 = vpop.f32.mrf.mxu1 }
 0x480   :  { %v576_v8 = vmul.f32 %v1925_v59, %v1925_v59 }
 0x481   :  { %v1927_v60 = vpop.f32.mrf.mxu1 }
 0x482   :  { %v575_v9 = vmul.f32 %v1927_v60, %v1927_v60 }
 0x483   :  { %v1929_v61 = vpop.f32.mrf.mxu1 }
 0x484   :  { %v578_v5 = vmul.f32 %v1929_v61, %v1929_v61 }
 0x485   :  { %v1931_v62 = vpop.f32.mrf.mxu1 }
 0x486   :  { %v577_v7 = vmul.f32 %v1931_v62, %v1931_v62 }
 0x487   :  { %v1933_v63 = vpop.f32.mrf.mxu1 }
 0x488   :  { %1447 = vmatprep.subr.mxu0 %v1933_v63  ;;  %v580_v1 = vmul.f32 %v1933_v63, %v1933_v63 }
 0x489   :  { %v1938_v2 = vpop.f32.mrf.mxu1  ;;  %1448 = vmatpush3.msra.mxu0 %v1933_v63 }
 0x48a   :  { %595 = vadd.xlane.f32.xlu0 %v580_v1  ;;  %1449 = vmatprep.subr.mxu0 %v1938_v2  ;;  %v579_v4 = vmul.f32 %v1938_v2, %v1938_v2 }
 0x48b   :  { %1450 = vmatpush3.msra.mxu0 %v1938_v2 }
 0x48c   :  { %1451 = vmatprep.subr.mxu0 %v1929_v61  ;;  %593 = vadd.xlane.f32.xlu1 %v579_v4 }
 0x48d   :  { %1452 = vmatpush3.msra.mxu0 %v1929_v61 }
 0x48e   :  { %591 = vadd.xlane.f32.xlu0 %v578_v5  ;;  %1453 = vmatprep.subr.mxu0 %v1931_v62 }
 0x48f   :  { %1454 = vmatpush3.msra.mxu0 %v1931_v62 }
 0x490   :  { %1455 = vmatprep.subr.mxu0 %v1925_v59  ;;  %589 = vadd.xlane.f32.xlu1 %v577_v7 }
 0x491   :  { %1456 = vmatpush3.msra.mxu0 %v1925_v59 }
 0x492   :  { %587 = vadd.xlane.f32.xlu0 %v576_v8  ;;  %1457 = vmatprep.subr.mxu0 %v1927_v60 }
 0x493   :  { %1458 = vmatpush3.msra.mxu0 %v1927_v60 }
 0x494   :  { %1459 = vmatprep.subr.mxu0 %v1921_v57  ;;  %585 = vadd.xlane.f32.xlu1 %v575_v9 }
 0x495   :  { %1460 = vmatpush3.msra.mxu0 %v1921_v57 }
 0x496   :  { %583 = vadd.xlane.f32.xlu0 %v574_v11  ;;  %1461 = vmatprep.subr.mxu0 %v1923_v58 }
 0x497   :  { %1462 = vmatpush3.msra.mxu0 %v1923_v58 }
 0x498   :  { %581 = vadd.xlane.f32.xlu1 %v573_v12 }
 0x513   :  { %v596_v13 = vpop.xlane.xlu0 %595 }
 0x514   :  { %v604_v15 = vmax.f32 %v596_v13, 1e-24 }
 0x515   :  { %v594_v16 = vpop.xlane.xlu1 %593 }
 0x516   :  { %1570 = vrsqrt.f32 %v604_v15  ;;  %v603_v17 = vmax.f32 %v594_v16, 1e-24 }
 0x517   :  { %v592_v19 = vpop.xlane.xlu0 %591 }
 0x518   :  { %1572 = vrsqrt.f32 %v603_v17  ;;  %v602_v20 = vmax.f32 %v592_v19, 1e-24 }
 0x519   :  { %v590_v21 = vpop.xlane.xlu1 %589 }
 0x51a   :  { %1574 = vrsqrt.f32 %v602_v20  ;;  %v601_v23 = vmax.f32 %v590_v21, 1e-24 }
 0x51b   :  { %v588_v24 = vpop.xlane.xlu0 %587 }
 0x51c   :  { %1576 = vrsqrt.f32 %v601_v23  ;;  %v600_v27 = vmax.f32 %v588_v24, 1e-24 }
 0x51d   :  { %v586_v25 = vpop.xlane.xlu1 %585 }
 0x51e   :  { %1578 = vrsqrt.f32 %v600_v27  ;;  %v599_v29 = vmax.f32 %v586_v25, 1e-24 }
 0x51f   :  { %v584_v32 = vpop.xlane.xlu0 %583 }
 0x520   :  { %v598_v35 = vmax.f32 %v584_v32, 1e-24 }
 0x521   :  { %v582_v28 = vpop.xlane.xlu1 %581 }
 0x522   :  { %v597_v30 = vmax.f32 %v582_v28, 1e-24 }
 0x523   :  { %v1571_v31 = vpop.eup %1570 }
 0x524   :  { %1580 = vrsqrt.f32 %v597_v30  ;;  %v620_v33 = vmul.f32 %v1571_v31, %v1933_v63  ;;  %v629_v9 = vmul.f32 %v1571_v31, %v621_v43 }
 0x525   :  { %v1573_v34 = vpop.eup %1572  ;;  %1582 = vrsqrt.f32 %v599_v29 }
 0x526   :  { %1419 = vmatprep.subr.mxu1 %v620_v33  ;;  %v619_v36 = vmul.f32 %v1573_v34, %v1938_v2  ;;  %1584 = vrsqrt.f32 %v598_v35  ;;  %v628_v8 = vmul.f32 %v1573_v34, %v621_v43 }
 0x527   :  { %v1575_v37 = vpop.eup %1574  ;;  %1420 = vmatpush3.xpose.msra.mxu1 %v620_v33 }
 0x528   :  { %1421 = vmatprep.subr.mxu1 %v619_v36  ;;  %v618_v38 = vmul.f32 %v1575_v37, %v1929_v61  ;;  %v627_v5 = vmul.f32 %v1575_v37, %v621_v43  ;;  %v636_v11 = vmul.f32 %v628_v8, %v1938_v2 }
 0x529   :  { %v1577_v39 = vpop.eup %1576 }
 0x52a   :  { %v617_v40 = vmul.f32 %v1577_v39, %v1931_v62  ;;  %v626_v1 = vmul.f32 %v1577_v39, %v621_v43 }
 0x52b   :  { %1422 = vmatpush3.xpose.msra.mxu1 %v619_v36  ;;  %v1579_v41 = vpop.eup %1578 }
 0x52c   :  { %1423 = vmatprep.subr.mxu1 %v618_v38  ;;  %v616_v44 = vmul.f32 %v1579_v41, %v1925_v59  ;;  %v625_v55 = vmul.f32 %v1579_v41, %v621_v43  ;;  %v634_v7 = vmul.f32 %v626_v1, %v1931_v62 }
 0x52e   :  { %v633_v4 = vmul.f32 %v1925_v59, %v625_v55 }
 0x52f   :  { %1424 = vmatpush3.xpose.msra.mxu1 %v618_v38 }
 0x530   :  { %1425 = vmatprep.subr.mxu1 %v617_v40 }
 0x531   :  { %v1581_v42 = vpop.eup %1580 }
 0x532   :  { %v622_v45 = vmul.f32 %v1581_v42, %v621_v43  ;;  %v1583_v46 = vpop.eup %1582  ;;  %v613_v51 = vmul.f32 %v1581_v42, %v1923_v58 }
 0x533   :  { %1426 = vmatpush3.xpose.msra.mxu1 %v617_v40  ;;  %v615_v48 = vmul.f32 %v1583_v46, %v1927_v60  ;;  %v1585_v49 = vpop.eup %1584  ;;  %v624_v53 = vmul.f32 %v1583_v46, %v621_v43 }
 0x534   :  { %1427 = vmatprep.subr.mxu1 %v616_v44  ;;  %v630_v47 = vmul.f32 %v622_v45, %v1923_v58  ;;  %v614_v50 = vmul.f32 %v1585_v49, %v1921_v57  ;;  %v623_v52 = vmul.f32 %v1585_v49, %v621_v43  ;;  %v635_v58 = vmul.f32 %v1929_v61, %v627_v5 }
 0x535   :  { %v632_v56 = vmul.f32 %v624_v53, %v1927_v60 }
 0x536   :  { %1435 = vmatprep.mubr.f32.mxu1 %v630_v47  ;;  %v631_v54 = vmul.f32 %v1921_v57, %v623_v52  ;;  %v637_v57 = vmul.f32 %v1933_v63, %v629_v9 }
 0x537   :  { %1428 = vmatpush3.xpose.msra.mxu1 %v616_v44 }
 0x538   :  { %1429 = vmatprep.subr.mxu1 %v615_v48 }
 0x53b   :  { %1430 = vmatpush3.xpose.msra.mxu1 %v615_v48 }
 0x53c   :  { %1431 = vmatprep.subr.mxu1 %v614_v50 }
 0x53f   :  { %1432 = vmatpush3.xpose.msra.mxu1 %v614_v50 }
 0x540   :  { %1433 = vmatprep.subr.mxu1 %v613_v51 }
 0x543   :  { %1434 = vmatpush3.xpose.msra.mxu1 %v613_v51 }
 0x546   :  { %1436 = vmatmul.mubr.f32.vlgmr.msra.gmra.mxu1 %v631_v54 }
 0x547   :  { %1438 = vmatprep.mubr.f32.mxu1 %v632_v56 }
 0x54a   :  { %1439 = vmatmul.mubr.f32.gmra.mxu1 %v633_v4 }
 0x54b   :  { %1441 = vmatprep.mubr.f32.mxu1 %v634_v7 }
 0x54e   :  { %1442 = vmatmul.mubr.f32.gmra.mxu1 %v635_v58 }
 0x54f   :  { %1444 = vmatprep.mubr.f32.mxu1 %v636_v11 }
 0x552   :  { %1445 = vmatmul.mubr.f32.gmra.mxu1 %v637_v57 }
 0x606   :  { %v1437_v60 = vpop.f32.mrf.mxu1 }
 0x607   :  { %v746_v12 = vsel %vm346_vm0, %v1437_v60, -inf }
 0x608   :  { %747 = vmax.xlane.f32.xlu1 %v746_v12  ;;  %v704_v59 = vpop.f32.mrf.mxu1 }
 0x609   :  { %v743_v62 = vsel %vm346_vm0, %v704_v59, -inf }
 0x60a   :  { %744 = vmax.xlane.f32.xlu0 %v743_v62  ;;  %v1440_v13 = vpop.f32.mrf.mxu1  ;;  %v983_v62 = vld [vmem:[#allocation3 + $0x78] sm:$0xff] }
 0x60b   :  { %v752_v15 = vsel %vm346_vm0, %v1440_v13, -inf  ;;  %1475 = vmatprep.subr.mxu0 %v983_v62 }
 0x60c   :  { %753 = vmax.xlane.f32.xlu1 %v752_v15  ;;  %v714_v61 = vpop.f32.mrf.mxu1 }
 0x60d   :  { %v749_v2 = vsel %vm346_vm0, %v714_v61, -inf }
 0x60e   :  { %750 = vmax.xlane.f32.xlu0 %v749_v2  ;;  %v1443_v16 = vpop.f32.mrf.mxu1 }
 0x60f   :  { %v758_v63 = vsel %vm346_vm0, %v1443_v16, -inf }
 0x610   :  { %759 = vmax.xlane.f32.xlu1 %v758_v63  ;;  %v724_v17 = vpop.f32.mrf.mxu1 }
 0x611   :  { %v755_v19 = vsel %vm346_vm0, %v724_v17, -inf }
 0x612   :  { %756 = vmax.xlane.f32.xlu0 %v755_v19  ;;  %v1446_v20 = vpop.f32.mrf.mxu1 }
 0x613   :  { %v764_v21 = vsel %vm346_vm0, %v1446_v20, -inf }
 0x614   :  { %765 = vmax.xlane.f32.xlu1 %v764_v21  ;;  %v734_v23 = vpop.f32.mrf.mxu1 }
 0x615   :  { %v761_v24 = vsel %vm346_vm0, %v734_v23, -inf }
 0x616   :  { %762 = vmax.xlane.f32.xlu0 %v761_v24 }
 0x691   :  { %v748_v25 = vpop.xlane.xlu1 %747 }
 0x692   :  { %v768_v27 = vsub.f32 %v1437_v60, %v748_v25 }
 0x693   :  { %v745_v28 = vpop.xlane.xlu0 %744 }
 0x694   :  { %v777_v29 = vmul.f32 1.442695, %v768_v27  ;;  %v767_v30 = vsub.f32 %v704_v59, %v745_v28  ;;  %v981_v27 = vld [vmem:[#allocation3 + $0x68] sm:$0xff] }
 0x695   :  { %v754_v31 = vpop.xlane.xlu1 %753 }
 0x696   :  { %1586 = vpow2.f32 %v777_v29  ;;  %v775_v32 = vmul.f32 1.442695, %v767_v30  ;;  %v770_v33 = vsub.f32 %v1440_v13, %v754_v31  ;;  %v980_v30 = vld [vmem:[#allocation3 + $0x60] sm:$0xff] }
 0x697   :  { %v751_v34 = vpop.xlane.xlu0 %750 }
 0x698   :  { %1588 = vpow2.f32 %v775_v32  ;;  %v781_v35 = vmul.f32 1.442695, %v770_v33  ;;  %v769_v36 = vsub.f32 %v714_v61, %v751_v34  ;;  %v979_v33 = vld [vmem:[#allocation3 + $0x58] sm:$0xff] }
 0x699   :  { %v760_v37 = vpop.xlane.xlu1 %759 }
 0x69a   :  { %1590 = vpow2.f32 %v781_v35  ;;  %v779_v38 = vmul.f32 1.442695, %v769_v36  ;;  %v772_v39 = vsub.f32 %v1443_v16, %v760_v37  ;;  %v978_v36 = vld [vmem:[#allocation3 + $0x50] sm:$0xff] }
 0x69b   :  { %v757_v40 = vpop.xlane.xlu0 %756 }
 0x69c   :  { %1592 = vpow2.f32 %v779_v38  ;;  %v785_v41 = vmul.f32 1.442695, %v772_v39  ;;  %v771_v42 = vsub.f32 %v724_v17, %v757_v40  ;;  %v977_v39 = vld [vmem:[#allocation3 + $0x48] sm:$0xff] }
 0x69d   :  { %v766_v43 = vpop.xlane.xlu1 %765 }
 0x69e   :  { %1594 = vpow2.f32 %v785_v41  ;;  %v783_v44 = vmul.f32 1.442695, %v771_v42  ;;  %v774_v45 = vsub.f32 %v1446_v20, %v766_v43  ;;  %v976_v41 = vld [vmem:[#allocation3 + $0x40] sm:$0xff]  ;;  %v975_v42 = vld [vmem:[#allocation3 + $0x38] sm:$0xff]  ;;  %v974_v43 = vld [vmem:[#allocation3 + $0x30] sm:$0xff] }
 0x69f   :  { %v763_v46 = vpop.xlane.xlu0 %762 }
 0x6a0   :  { %1596 = vpow2.f32 %v783_v44  ;;  %v789_v47 = vmul.f32 1.442695, %v774_v45  ;;  %v773_v48 = vsub.f32 %v734_v23, %v763_v46  ;;  %v982_v23 = vld [vmem:[#allocation3 + $0x70] sm:$0xff]  ;;  %v973_v44 = vld [vmem:[#allocation3 + $0x28] sm:$0xff]  ;;  %v972_v45 = vld [vmem:[#allocation3 + $0x20] sm:$0xff] }
 0x6a1   :  { %v971_v46 = vld [vmem:[#allocation3 + $0x18] sm:$0xff] }
 0x6a2   :  { %1598 = vpow2.f32 %v789_v47  ;;  %v787_v49 = vmul.f32 1.442695, %v773_v48  ;;  %v970_v47 = vld [vmem:[#allocation3 + $0x10] sm:$0xff]  ;;  %v969_v48 = vld [vmem:[#allocation3 + $0x8] sm:$0xff] }
 0x6a3   :  { %v1587_v50 = vpop.eup %1586 }
 0x6a4   :  { %1600 = vpow2.f32 %v787_v49  ;;  %v792_v51 = vmul.f32 %v1587_v50, %v1860_v0  ;;  %v968_v49 = vld [vmem:[#allocation3] sm:$0xff] }
 0x6a5   :  { %v1589_v52 = vpop.eup %1588 }
 0x6a6   :  { %v802_v53 = vsel %vm346_vm0, %v792_v51, 0.0  ;;  %v791_v54 = vmul.f32 %v1589_v52, %v1865_v3 }
 0x6a7   :  { %v1591_v55 = vpop.eup %1590  ;;  %803 = vadd.xlane.f32.xlu1 %v802_v53 }
 0x6a8   :  { %v799_v56 = vsel %vm346_vm0, %v791_v54, 0.0  ;;  %v794_v1 = vmul.f32 %v1591_v55, %v1871_v6 }
 0x6a9   :  { %v1593_v4 = vpop.eup %1592  ;;  %800 = vadd.xlane.f32.xlu0 %v799_v56 }
 0x6aa   :  { %v808_v5 = vsel %vm346_vm0, %v794_v1, 0.0  ;;  %v793_v7 = vmul.f32 %v1593_v4, %v1878_v10  ;;  %v1206_v4 = vld [vmem:[%s2084_s5] ss:$0 sm:$0xff] }
 0x6ab   :  { %v1595_v8 = vpop.eup %1594  ;;  %809 = vadd.xlane.f32.xlu1 %v808_v5 }
 0x6ac   :  { %v805_v0 = vsel %vm346_vm0, %v793_v7, 0.0  ;;  %v796_v58 = vmul.f32 %v1595_v8, %v1885_v14 }
 0x6ad   :  { %v1597_v9 = vpop.eup %1596  ;;  %806 = vadd.xlane.f32.xlu0 %v805_v0 }
 0x6ae   :  { %v814_v3 = vsel %vm346_vm0, %v796_v58, 0.0  ;;  %v795_v11 = vmul.f32 %v1597_v9, %v1892_v18 }
 0x6af   :  { %v1599_v57 = vpop.eup %1598  ;;  %815 = vadd.xlane.f32.xlu1 %v814_v3 }
 0x6b0   :  { %v811_v6 = vsel %vm346_vm0, %v795_v11, 0.0  ;;  %v798_v60 = vmul.f32 %v1599_v57, %v1899_v22 }
 0x6b1   :  { %v1601_v12 = vpop.eup %1600  ;;  %812 = vadd.xlane.f32.xlu0 %v811_v6 }
 0x6b2   :  { %v820_v10 = vsel %vm346_vm0, %v798_v60, 0.0  ;;  %v797_v59 = vmul.f32 %v1601_v12, %v1906_v26 }
 0x6b3   :  { %821 = vadd.xlane.f32.xlu1 %v820_v10 }
 0x6b4   :  { %v817_v14 = vsel %vm346_vm0, %v797_v59, 0.0 }
 0x6b5   :  { %818 = vadd.xlane.f32.xlu0 %v817_v14 }
 0x730   :  { %v804_v13 = vpop.xlane.xlu1 %803 }
 0x731   :  { %1602 = vrcp.f32 %v804_v13 }
 0x732   :  { %v801_v18 = vpop.xlane.xlu0 %800 }
 0x733   :  { %1604 = vrcp.f32 %v801_v18 }
 0x734   :  { %v810_v15 = vpop.xlane.xlu1 %809 }
 0x735   :  { %1606 = vrcp.f32 %v810_v15 }
 0x736   :  { %v807_v61 = vpop.xlane.xlu0 %806 }
 0x737   :  { %1608 = vrcp.f32 %v807_v61 }
 0x738   :  { %v816_v22 = vpop.xlane.xlu1 %815 }
 0x739   :  { %1610 = vrcp.f32 %v816_v22 }
 0x73a   :  { %v813_v2 = vpop.xlane.xlu0 %812 }
 0x73b   :  { %1612 = vrcp.f32 %v813_v2 }
 0x73c   :  { %v822_v16 = vpop.xlane.xlu1 %821 }
 0x73d   :  { %1614 = vrcp.f32 %v822_v16 }
 0x73e   :  { %v819_v26 = vpop.xlane.xlu0 %818  ;;  %v1603_v63 = vpop.eup %1602 }
 0x73f   :  { %1616 = vrcp.f32 %v819_v26  ;;  %v832_v20 = vmul.f32 %v1603_v63, %v792_v51 }
 0x740   :  { %v1605_v17 = vpop.eup %1604 }
 0x741   :  { %v831_v19 = vmul.f32 %v1605_v17, %v791_v54 }
 0x742   :  { %v1607_v21 = vpop.eup %1606 }
 0x743   :  { %1463 = vmatprep.mubr.msk.f32.mxu0 %vm346_vm0, %v831_v19  ;;  %v834_v28 = vmul.f32 %v1607_v21, %v794_v1 }
 0x744   :  { %v1609_v24 = vpop.eup %1608  ;;  %1464 = vmatmul.mubr.msk.f32.vlgmr.msra.gmra.mxu0 %vm346_vm0, %v832_v20 }
 0x745   :  { %v833_v25 = vmul.f32 %v1609_v24, %v793_v7  ;;  %1476 = vmatpush3.msra.mxu0 %v983_v62 }
 0x746   :  { %1477 = vmatprep.subr.mxu0 %v982_v23  ;;  %v1611_v29 = vpop.eup %1610 }
 0x747   :  { %1466 = vmatprep.mubr.msk.f32.mxu0 %vm346_vm0, %v833_v25  ;;  %1478 = vmatpush3.msra.mxu0 %v982_v23  ;;  %v836_v34 = vmul.f32 %v1611_v29, %v796_v58 }
 0x748   :  { %v1613_v31 = vpop.eup %1612  ;;  %1467 = vmatmul.mubr.msk.f32.gmra.mxu0 %vm346_vm0, %v834_v28  ;;  %1479 = vmatprep.subr.mxu0 %v981_v27 }
 0x749   :  { %v835_v32 = vmul.f32 %v1613_v31, %v795_v11  ;;  %1480 = vmatpush3.msra.mxu0 %v981_v27 }
 0x74a   :  { %1481 = vmatprep.subr.mxu0 %v980_v30  ;;  %v1615_v35 = vpop.eup %1614 }
 0x74b   :  { %1469 = vmatprep.mubr.msk.f32.mxu0 %vm346_vm0, %v835_v32  ;;  %1482 = vmatpush3.msra.mxu0 %v980_v30  ;;  %v838_v40 = vmul.f32 %v1615_v35, %v798_v60 }
 0x74c   :  { %v1617_v37 = vpop.eup %1616  ;;  %1470 = vmatmul.mubr.msk.f32.gmra.mxu0 %vm346_vm0, %v836_v34  ;;  %1483 = vmatprep.subr.mxu0 %v979_v33 }
 0x74d   :  { %v837_v38 = vmul.f32 %v1617_v37, %v797_v59  ;;  %1484 = vmatpush3.msra.mxu0 %v979_v33 }
 0x74e   :  { %1485 = vmatprep.subr.mxu0 %v978_v36 }
 0x74f   :  { %1472 = vmatprep.mubr.msk.f32.mxu0 %vm346_vm0, %v837_v38  ;;  %1486 = vmatpush3.msra.mxu0 %v978_v36 }
 0x750   :  { %1473 = vmatmul.mubr.msk.f32.gmra.mxu0 %vm346_vm0, %v838_v40  ;;  %1487 = vmatprep.subr.mxu0 %v977_v39 }
 0x751   :  { %1488 = vmatpush3.msra.mxu0 %v977_v39 }
 0x752   :  { %1489 = vmatprep.subr.mxu0 %v976_v41 }
 0x753   :  { %1490 = vmatpush3.msra.mxu0 %v976_v41 }
 0x754   :  { %1491 = vmatprep.subr.mxu0 %v975_v42 }
 0x755   :  { %1492 = vmatpush3.msra.mxu0 %v975_v42 }
 0x756   :  { %1493 = vmatprep.subr.mxu0 %v974_v43 }
 0x757   :  { %1494 = vmatpush3.msra.mxu0 %v974_v43 }
 0x758   :  { %1495 = vmatprep.subr.mxu0 %v973_v44 }
 0x759   :  { %1496 = vmatpush3.msra.mxu0 %v973_v44 }
 0x75a   :  { %1497 = vmatprep.subr.mxu0 %v972_v45 }
 0x75b   :  { %1498 = vmatpush3.msra.mxu0 %v972_v45 }
 0x75c   :  { %1499 = vmatprep.subr.mxu0 %v971_v46 }
 0x75d   :  { %1500 = vmatpush3.msra.mxu0 %v971_v46 }
 0x75e   :  { %1501 = vmatprep.subr.mxu0 %v970_v47 }
 0x75f   :  { %1502 = vmatpush3.msra.mxu0 %v970_v47 }
 0x760   :  { %1503 = vmatprep.subr.mxu0 %v969_v48 }
 0x761   :  { %1504 = vmatpush3.msra.mxu0 %v969_v48 }
 0x762   :  { %1505 = vmatprep.subr.mxu0 %v968_v49 }
 0x763   :  { %1506 = vmatpush3.msra.mxu0 %v968_v49 }
 0x804   :  { %v1465_v50 = vpop.f32.mrf.mxu0 }
 0x806   :  { %v929_v51 = vpop.f32.mrf.mxu0 }
 0x807   :  { %1507 = vmatprep.mubr.f32.mxu0 %v929_v51 }
 0x808   :  { %v1468_v52 = vpop.f32.mrf.mxu0  ;;  %1508 = vmatmul.mubr.f32.vlgmr.msra.gmra.mxu0 %v1465_v50 }
 0x80a   :  { %v939_v53 = vpop.f32.mrf.mxu0 }
 0x80b   :  { %1510 = vmatprep.mubr.f32.mxu0 %v939_v53 }
 0x80c   :  { %v1471_v54 = vpop.f32.mrf.mxu0  ;;  %1511 = vmatmul.mubr.f32.gmra.mxu0 %v1468_v52 }
 0x80e   :  { %v949_v55 = vpop.f32.mrf.mxu0 }
 0x80f   :  { %1513 = vmatprep.mubr.f32.mxu0 %v949_v55 }
 0x810   :  { %v1474_v56 = vpop.f32.mrf.mxu0  ;;  %1514 = vmatmul.mubr.f32.gmra.mxu0 %v1471_v54 }
 0x812   :  { %v959_v1 = vpop.f32.mrf.mxu0 }
 0x813   :  { %1516 = vmatprep.mubr.f32.mxu0 %v959_v1 }
 0x814   :  { %1517 = vmatmul.mubr.f32.gmra.mxu0 %v1474_v56 }
 0x8c8   :  { %v1509_v5 = vpop.f32.mrf.mxu0 }
 0x8c9   :  { %v1063_v7 = vadd.f32 %v1509_v5, %v1206_v4 }
 0x8ca   :  { %v1057_v8 = vpop.f32.mrf.mxu0 }
 0x8cb   :  { %v1058_v0 = vadd.f32 %v1206_v4, %v1057_v8  ;;  %1098 = vmax.xlane.f32.xlu1 %v1063_v7 }
 0x8cc   :  { %v1512_v58 = vpop.f32.mrf.mxu0 }
 0x8cd   :  { %v1073_v9 = vadd.f32 %v1512_v58, %v1206_v4  ;;  %1096 = vmax.xlane.f32.xlu0 %v1058_v0 }
 0x8ce   :  { %v1067_v3 = vpop.f32.mrf.mxu0 }
 0x8cf   :  { %v1068_v11 = vadd.f32 %v1206_v4, %v1067_v3  ;;  %1102 = vmax.xlane.f32.xlu1 %v1073_v9 }
 0x8d0   :  { %v1515_v57 = vpop.f32.mrf.mxu0 }
 0x8d1   :  { %v1083_v6 = vadd.f32 %v1515_v57, %v1206_v4  ;;  %1100 = vmax.xlane.f32.xlu0 %v1068_v11 }
 0x8d2   :  { %v1077_v60 = vpop.f32.mrf.mxu0 }
 0x8d3   :  { %v1078_v12 = vadd.f32 %v1206_v4, %v1077_v60  ;;  %1106 = vmax.xlane.f32.xlu1 %v1083_v6 }
 0x8d4   :  { %v1518_v10 = vpop.f32.mrf.mxu0 }
 0x8d5   :  { %v1093_v59 = vadd.f32 %v1518_v10, %v1206_v4  ;;  %1104 = vmax.xlane.f32.xlu0 %v1078_v12 }
 0x8d6   :  { %v1087_v14 = vpop.f32.mrf.mxu0 }
 0x8d7   :  { %v1088_v62 = vadd.f32 %v1206_v4, %v1087_v14  ;;  %1110 = vmax.xlane.f32.xlu1 %v1093_v59 }
 0x8d9   :  { %1108 = vmax.xlane.f32.xlu0 %v1088_v62 }
 0x954   :  { %v1099_v13 = vpop.xlane.xlu1 %1098 }
 0x955   :  { %v2023_v18 = vsub.f32 %v1063_v7, %v1099_v13 }
 0x956   :  { %v1097_v15 = vpop.xlane.xlu0 %1096 }
 0x957   :  { %v1122_v61 = vmul.f32 1.442695, %v2023_v18  ;;  %v2026_v22 = vsub.f32 %v1058_v0, %v1097_v15 }
 0x958   :  { %v1103_v2 = vpop.xlane.xlu1 %1102 }
 0x959   :  { %1618 = vpow2.f32 %v1122_v61  ;;  %v1120_v16 = vmul.f32 1.442695, %v2026_v22  ;;  %v2029_v26 = vsub.f32 %v1073_v9, %v1103_v2 }
 0x95a   :  { %v1101_v63 = vpop.xlane.xlu0 %1100 }
 0x95b   :  { %1620 = vpow2.f32 %v1120_v16  ;;  %v1126_v17 = vmul.f32 1.442695, %v2029_v26  ;;  %v2032_v19 = vsub.f32 %v1068_v11, %v1101_v63 }
 0x95c   :  { %v1107_v20 = vpop.xlane.xlu1 %1106 }
 0x95d   :  { %1622 = vpow2.f32 %v1126_v17  ;;  %v1124_v21 = vmul.f32 1.442695, %v2032_v19  ;;  %v2035_v23 = vsub.f32 %v1083_v6, %v1107_v20 }
 0x95e   :  { %v1105_v24 = vpop.xlane.xlu0 %1104 }
 0x95f   :  { %1624 = vpow2.f32 %v1124_v21  ;;  %v1130_v25 = vmul.f32 1.442695, %v2035_v23  ;;  %v2038_v27 = vsub.f32 %v1078_v12, %v1105_v24 }
 0x960   :  { %v1111_v28 = vpop.xlane.xlu1 %1110 }
 0x961   :  { %1626 = vpow2.f32 %v1130_v25  ;;  %v1128_v29 = vmul.f32 1.442695, %v2038_v27  ;;  %v2041_v30 = vsub.f32 %v1093_v59, %v1111_v28 }
 0x962   :  { %v1109_v31 = vpop.xlane.xlu0 %1108 }
 0x963   :  { %1628 = vpow2.f32 %v1128_v29  ;;  %v1134_v32 = vmul.f32 1.442695, %v2041_v30  ;;  %v2044_v33 = vsub.f32 %v1088_v62, %v1109_v31 }
 0x965   :  { %1630 = vpow2.f32 %v1134_v32  ;;  %v1132_v34 = vmul.f32 1.442695, %v2044_v33 }
 0x966   :  { %v1619_v35 = vpop.eup %1618 }
 0x967   :  { %1632 = vpow2.f32 %v1132_v34  ;;  %1138 = vadd.xlane.f32.xlu1 %v1619_v35 }
 0x968   :  { %v1621_v36 = vpop.eup %1620 }
 0x969   :  { %1136 = vadd.xlane.f32.xlu0 %v1621_v36 }
 0x96a   :  { %v1623_v37 = vpop.eup %1622 }
 0x96b   :  { %1142 = vadd.xlane.f32.xlu1 %v1623_v37 }
 0x96c   :  { %v1625_v38 = vpop.eup %1624 }
 0x96d   :  { %1140 = vadd.xlane.f32.xlu0 %v1625_v38 }
 0x96e   :  { %v1627_v39 = vpop.eup %1626 }
 0x96f   :  { %1146 = vadd.xlane.f32.xlu1 %v1627_v39 }
 0x970   :  { %v1629_v40 = vpop.eup %1628 }
 0x971   :  { %1144 = vadd.xlane.f32.xlu0 %v1629_v40 }
 0x972   :  { %v1631_v41 = vpop.eup %1630 }
 0x973   :  { %1150 = vadd.xlane.f32.xlu1 %v1631_v41 }
 0x974   :  { %v1633_v42 = vpop.eup %1632 }
 0x975   :  { %1148 = vadd.xlane.f32.xlu0 %v1633_v42 }
 0x9f0   :  { %v1139_v43 = vpop.xlane.xlu1 %1138 }
 0x9f1   :  { %1634 = vlog2.f32 %v1139_v43 }
 0x9f2   :  { %v1137_v44 = vpop.xlane.xlu0 %1136 }
 0x9f3   :  { %1636 = vlog2.f32 %v1137_v44 }
 0x9f4   :  { %v1143_v45 = vpop.xlane.xlu1 %1142 }
 0x9f5   :  { %1638 = vlog2.f32 %v1143_v45 }
 0x9f6   :  { %v1141_v46 = vpop.xlane.xlu0 %1140 }
 0x9f7   :  { %1640 = vlog2.f32 %v1141_v46 }
 0x9f8   :  { %v1147_v47 = vpop.xlane.xlu1 %1146 }
 0x9f9   :  { %1642 = vlog2.f32 %v1147_v47 }
 0x9fa   :  { %v1145_v48 = vpop.xlane.xlu0 %1144 }
 0x9fb   :  { %1644 = vlog2.f32 %v1145_v48 }
 0x9fc   :  { %v1151_v49 = vpop.xlane.xlu1 %1150 }
 0x9fd   :  { %1646 = vlog2.f32 %v1151_v49 }
 0x9fe   :  { %v1635_v50 = vpop.eup %1634  ;;  %v1149_v51 = vpop.xlane.xlu0 %1148 }
 0x9ff   :  { %v1155_v52 = vmul.f32 0.6931472, %v1635_v50  ;;  %1648 = vlog2.f32 %v1149_v51 }
 0xa00   :  { %v1637_v53 = vpop.eup %1636 }
 0xa01   :  { %v1169_v54 = vsub.f32 %v2023_v18, %v1155_v52  ;;  %v1153_v55 = vmul.f32 0.6931472, %v1637_v53 }
 0xa02   :  { %v1639_v56 = vpop.eup %1638 }
 0xa03   :  { %1177 = vst [vmem:[%s2086_s7 + $0x8] sm:$0xff] %v1169_v54  ;;  %v1168_v1 = vsub.f32 %v2026_v22, %v1153_v55  ;;  %v1159_v4 = vmul.f32 0.6931472, %v1639_v56 }
 0xa04   :  { %v1641_v5 = vpop.eup %1640 }
 0xa05   :  { %1176 = vst [vmem:[%s2086_s7] sm:$0xff] %v1168_v1  ;;  %v1171_v7 = vsub.f32 %v2029_v26, %v1159_v4  ;;  %v1157_v8 = vmul.f32 0.6931472, %v1641_v5 }
 0xa06   :  { %v1643_v0 = vpop.eup %1642 }
 0xa07   :  { %1179 = vst [vmem:[%s2086_s7 + $0x18] sm:$0xff] %v1171_v7  ;;  %v1170_v58 = vsub.f32 %v2032_v19, %v1157_v8  ;;  %v1163_v9 = vmul.f32 0.6931472, %v1643_v0 }
 0xa08   :  { %v1645_v3 = vpop.eup %1644 }
 0xa09   :  { %1178 = vst [vmem:[%s2086_s7 + $0x10] sm:$0xff] %v1170_v58  ;;  %v1173_v11 = vsub.f32 %v2035_v23, %v1163_v9  ;;  %v1161_v57 = vmul.f32 0.6931472, %v1645_v3 }
 0xa0a   :  { %v1647_v6 = vpop.eup %1646 }
 0xa0b   :  { %1181 = vst [vmem:[%s2086_s7 + $0x28] sm:$0xff] %v1173_v11  ;;  %v1172_v60 = vsub.f32 %v2038_v27, %v1161_v57  ;;  %v1167_v12 = vmul.f32 0.6931472, %v1647_v6 }
 0xa0c   :  { %v1649_v10 = vpop.eup %1648 }
 0xa0d   :  { %1180 = vst [vmem:[%s2086_s7 + $0x20] sm:$0xff] %v1172_v60  ;;  %v1175_v59 = vsub.f32 %v2041_v30, %v1167_v12  ;;  %v1165_v14 = vmul.f32 0.6931472, %v1649_v10 }
 0xa0f   :  { %1183 = vst [vmem:[%s2086_s7 + $0x38] sm:$0xff] %v1175_v59  ;;  %v1174_v62 = vsub.f32 %v2044_v33, %v1165_v14 }
 0xa11   :  { %1182 = vst [vmem:[%s2086_s7 + $0x30] sm:$0xff] %v1174_v62 }
 0xa12   :  { %1188 = vsyncpa [#allocation4], 1 }

</bundles_post_ra>
